<compile_context>
chip_gen: v7x
topology: tpu7x:2x2x1
jax: 0.10.0
libtpu: 0.0.40
codegen_flags: <defaults>
</compile_context>

<pallas_src>
import functools

import jax
import jax.numpy as jnp
from jax.experimental import pallas as pl
from jax.experimental.pallas import tpu as pltpu

IN_FEATURES = 3
OUT_FEATURES = 3


def _linear_hardsigmoid_kernel(x_ref, w_ref, b_ref, o_ref):
    # x_ref: (TM, 3)  input rows (OOB rows of a partial block are garbage but
    #                 are masked on writeback)
    # w_ref: (3, 3)   pre-transposed weight, pre-scaled by 1/6
    # b_ref: (1, 3)   bias, pre-scaled by 1/6 and shifted by +0.5
    x = x_ref[...]
    w = w_ref[...]

    # VPU-only contraction over K=3: three broadcast multiply-adds.
    v = b_ref[...]                       # (1, 3) broadcasts over the rows
    v = v + x[:, 0:1] * w[0:1, :]
    v = v + x[:, 1:2] * w[1:2, :]
    v = v + x[:, 2:3] * w[2:3, :]

    # hardsigmoid with the affine folded into the params: clamp(v, 0, 1).
    o_ref[...] = jnp.clip(v, 0.0, 1.0).astype(o_ref.dtype)


def prepare_params(weight, bias):
    """One-time parameter preprocessing (hoisted out of the per-call path).

    weight: (out, in) torch-style; bias: (out,).
    Folds hardsigmoid's affine:  clamp(xW^T + b + 3, 0, 6)/6
                               = clamp(x (W^T/6) + (b/6 + 0.5), 0, 1).
    """
    w_p = (weight.T.astype(jnp.float32)) * (1.0 / 6.0)          # (in, out)
    b_p = (bias.astype(jnp.float32) * (1.0 / 6.0) + 0.5)[None]  # (1, out)
    return w_p, b_p


@functools.partial(jax.jit, static_argnames=("tm",))
def _linear_hardsigmoid_call(x, w_p, b_p, tm):
    B = x.shape[0]
    grid = (pl.cdiv(B, tm),)
    return pl.pallas_call(
        _linear_hardsigmoid_kernel,
        out_shape=jax.ShapeDtypeStruct((B, OUT_FEATURES), jnp.float32),
        grid=grid,
        in_specs=[
            pl.BlockSpec((tm, IN_FEATURES), lambda i: (i, 0)),          # x rows
            pl.BlockSpec((IN_FEATURES, OUT_FEATURES), lambda i: (0, 0)),  # weight
            pl.BlockSpec((1, OUT_FEATURES), lambda i: (0, 0)),            # bias
        ],
        out_specs=pl.BlockSpec((tm, OUT_FEATURES), lambda i: (i, 0)),
        compiler_params=pltpu.CompilerParams(
            dimension_semantics=("parallel",)),
    )(x, w_p, b_p)


def _round_up(n, m):
    return ((n + m - 1) // m) * m


def _choose_tm(B):
    if B <= 8:
        # Fixed small tile: one partial block, no recompile per distinct tiny B.
        return 8
    # At least two grid steps so the 'parallel' axis can span both TensorCores
    # (v7x); harmless on v5e/v6e.  Cap at 1024 rows — VMEM is not a constraint.
    return min(1024, _round_up((B + 1) // 2, 8))


def linear_hardsigmoid(x, w_p, b_p):
    """x: (B, 3) float32; w_p/b_p from prepare_params()."""
    return _linear_hardsigmoid_call(x, w_p, b_p, _choose_tm(x.shape[0]))


if __name__ == "__main__":
    key = jax.random.PRNGKey(0)
    kx, kw, kb, kx2 = jax.random.split(key, 4)

    # Input matching the module: x = torch.randn(1, 3)
    x = jax.random.normal(kx, (1, 3), dtype=jnp.float32)

    # Deterministic Linear(3, 3) parameters (torch-style uniform init).
    bound = 1.0 / jnp.sqrt(3.0)
    weight = jax.random.uniform(kw, (3, 3), jnp.float32, -bound, bound)  # (out, in)
    bias = jax.random.uniform(kb, (3,), jnp.float32, -bound, bound)

    # Hoisted, one-time parameter prep (weights are constants across calls).
    w_p, b_p = prepare_params(weight, bias)
    w_p, b_p = jax.block_until_ready((w_p, b_p))

    def ref_fn(xx):
        return jnp.clip(xx @ weight.T + bias + 3.0, 0.0, 6.0) / 6.0

    # Primary case: the module's own shape (1, 3).
    out = jax.block_until_ready(linear_hardsigmoid(x, w_p, b_p))
    assert out.shape == (1, 3), out.shape
    assert jnp.allclose(out, ref_fn(x), atol=1e-5), (out, ref_fn(x))

    # Secondary case: a small batch that exercises a multi-step grid and
    # masked partial-block writeback (B=20, tm=8 -> grid of 3 with a ragged tail).
    x2 = jax.random.normal(kx2, (20, 3), dtype=jnp.float32)
    out2 = jax.block_until_ready(linear_hardsigmoid(x2, w_p, b_p))
    assert out2.shape == (20, 3), out2.shape
    assert jnp.allclose(out2, ref_fn(x2), atol=1e-5)

    print("KERNEL_OK")
</pallas_src>

<mosaic_0001>
module attributes {stable_mosaic.version = 11 : i64} {
  func.func @_linear_hardsigmoid_kernel(%arg0: i32, %arg1: memref<8x3xf32, #tpu.memory_space<vmem>>, %arg2: memref<3x3xf32, #tpu.memory_space<vmem>>, %arg3: memref<1x3xf32, #tpu.memory_space<vmem>>, %arg4: memref<8x3xf32, #tpu.memory_space<vmem>>) attributes {dimension_semantics = [#tpu.dimension_semantics<parallel>], iteration_bounds = array<i64: 1>, scalar_prefetch = 0 : i64, scratch_operands = 0 : i64, tpu.core_type = #tpu.core_type<tc>, window_params = [{transform_indices = @transform_0, window_bounds = array<i64: 8, 3>}, {pipeline_mode = #tpu.pipeline_mode<synchronous>, transform_indices = @transform_1, window_bounds = array<i64: 3, 3>}, {pipeline_mode = #tpu.pipeline_mode<synchronous>, transform_indices = @transform_2, window_bounds = array<i64: 1, 3>}, {transform_indices = @transform_3, window_bounds = array<i64: 8, 3>}]} {
    %c0 = arith.constant 0 : index
    %c0_0 = arith.constant 0 : index
    %0 = vector.load %arg1[%c0, %c0_0] : memref<8x3xf32, #tpu.memory_space<vmem>>, vector<8x3xf32>
    %c0_1 = arith.constant 0 : index
    %c0_2 = arith.constant 0 : index
    %1 = vector.load %arg2[%c0_1, %c0_2] : memref<3x3xf32, #tpu.memory_space<vmem>>, vector<3x3xf32>
    %c0_3 = arith.constant 0 : index
    %c0_4 = arith.constant 0 : index
    %2 = vector.load %arg3[%c0_3, %c0_4] : memref<1x3xf32, #tpu.memory_space<vmem>>, vector<1x3xf32>
    %3 = vector.extract_strided_slice %0 {offsets = [0, 0], sizes = [8, 1], strides = [1, 1]} : vector<8x3xf32> to vector<8x1xf32>
    %4 = vector.extract_strided_slice %1 {offsets = [0, 0], sizes = [1, 3], strides = [1, 1]} : vector<3x3xf32> to vector<1x3xf32>
    %5 = vector.broadcast %3 : vector<8x1xf32> to vector<8x3xf32>
    %6 = vector.broadcast %4 : vector<1x3xf32> to vector<8x3xf32>
    %7 = arith.mulf %5, %6 : vector<8x3xf32>
    %8 = vector.broadcast %2 : vector<1x3xf32> to vector<8x3xf32>
    %9 = arith.addf %8, %7 : vector<8x3xf32>
    %10 = vector.extract_strided_slice %0 {offsets = [0, 1], sizes = [8, 1], strides = [1, 1]} : vector<8x3xf32> to vector<8x1xf32>
    %11 = vector.extract_strided_slice %1 {offsets = [1, 0], sizes = [1, 3], strides = [1, 1]} : vector<3x3xf32> to vector<1x3xf32>
    %12 = vector.broadcast %10 : vector<8x1xf32> to vector<8x3xf32>
    %13 = vector.broadcast %11 : vector<1x3xf32> to vector<8x3xf32>
    %14 = arith.mulf %12, %13 : vector<8x3xf32>
    %15 = arith.addf %9, %14 : vector<8x3xf32>
    %16 = vector.extract_strided_slice %0 {offsets = [0, 2], sizes = [8, 1], strides = [1, 1]} : vector<8x3xf32> to vector<8x1xf32>
    %17 = vector.extract_strided_slice %1 {offsets = [2, 0], sizes = [1, 3], strides = [1, 1]} : vector<3x3xf32> to vector<1x3xf32>
    %18 = vector.broadcast %16 : vector<8x1xf32> to vector<8x3xf32>
    %19 = vector.broadcast %17 : vector<1x3xf32> to vector<8x3xf32>
    %20 = arith.mulf %18, %19 : vector<8x3xf32>
    %21 = arith.addf %15, %20 : vector<8x3xf32>
    %cst = arith.constant 0.000000e+00 : f32
    %cst_5 = arith.constant 1.000000e+00 : f32
    %22 = vector.broadcast %cst : f32 to vector<8x3xf32>
    %23 = arith.maximumf %22, %21 : vector<8x3xf32>
    %24 = vector.broadcast %cst_5 : f32 to vector<8x3xf32>
    %25 = arith.minimumf %24, %23 : vector<8x3xf32>
    %c0_6 = arith.constant 0 : index
    %c0_7 = arith.constant 0 : index
    %26 = vector.load %arg4[%c0_6, %c0_7] : memref<8x3xf32, #tpu.memory_space<vmem>>, vector<8x3xf32>
    tpu.vector_store %arg4[%c0_6, %c0_7], %25 {strides = array<i32>} : memref<8x3xf32, #tpu.memory_space<vmem>>, vector<8x3xf32>,
    return
  }
  func.func @transform_0(%arg0: i32) -> (i32, i32) {
    %c0_i32 = arith.constant 0 : i32
    %c0_i32_0 = arith.constant 0 : i32
    return %arg0, %c0_i32 : i32, i32
  }
  func.func @transform_1(%arg0: i32) -> (i32, i32) {
    %c0_i32 = arith.constant 0 : i32
    %c0_i32_0 = arith.constant 0 : i32
    %c0_i32_1 = arith.constant 0 : i32
    return %c0_i32, %c0_i32_0 : i32, i32
  }
  func.func @transform_2(%arg0: i32) -> (i32, i32) {
    %c0_i32 = arith.constant 0 : i32
    %c0_i32_0 = arith.constant 0 : i32
    %c0_i32_1 = arith.constant 0 : i32
    return %c0_i32, %c0_i32_0 : i32, i32
  }
  func.func @transform_3(%arg0: i32) -> (i32, i32) {
    %c0_i32 = arith.constant 0 : i32
    %c0_i32_0 = arith.constant 0 : i32
    return %arg0, %c0_i32 : i32, i32
  }
}

</mosaic_0001>

<bundles_post_ra>
// kernel: _linear_hardsigmoid_call.1
= control target key start
LH: loop header
LB: loop body
LE: loop exit
PB: predicated region body
PF: predicated region fallthrough
CT: control target
= control target key end

     0   :  { %8 = vsyncpa [#allocation3], 0  ;;  %s261_s0 = inlined_call_operand.hbm [shape: f32[1,3], index: 0, kind: input, shape index: {}]   ;;  %s262_s1 = inlined_call_operand.hbm [shape: f32[3,3], index: 1, kind: input, shape index: {}]   ;;  %s263_s2 = inlined_call_operand.vmem [shape: f32[1,3], index: 2, kind: input, shape index: {}]   ;;  %s264_s3 = inlined_call_operand.hbm [shape: f32[1,3], index: 3, kind: output, shape index: {}]  }
   0x1   :  { %9 = vsyncpa [#allocation6], 0 }
   0x2   :  { %10 = vsyncpa [#allocation4], 0 }
   0x3   :  { %15 = vsyncadd [#allocation3], 112  ;;  %s188_s12 = smov [#allocation2]   ;;  %s116_s16 = scalar_lea.hbm %s261_s0, 16 }
   0x4   :  { %s16_s13 = sshll.u32 %s188_s12, 4  ;;  %p117_p0 = scmp.ne.s32.totalorder %s261_s0, %s116_s16  ;;  %s17_s13 = int_to_ptr.vmem [resolvable:$true] %s16_s13 }
   0x5   :  { %p120_p1 = scmp.lt.u32.totalorder %s116_s16, %s261_s0 }
   0x7   :  { %p122_p2 = pnand %p120_p1, %p117_p0 }
   0x9   :  { %125 = shalt.err (!%p122_p2)
}
   0xa   :  { %s126_s21 = scalar_lea.vmem %s17_s13, 16  ;;  %s130_s22 = scalar_lea.vmem %s17_s13, 128 }
   0xb   :  { %p127_p3 = scmp.ne.s32.totalorder %s17_s13, %s126_s21  ;;  %p131_p4 = scmp.lt.s32.totalorder %s17_s13, %s17_s13 }
   0xc   :  { %p132_p5 = scmp.lt.s32.totalorder %s130_s22, %s126_s21 }
   0xe   :  { %p133_p6 = por %p132_p5, %p131_p4 }
  0x10   :  { %p134_p7 = pnand %p133_p6, %p127_p3 }
  0x12   :  { %137 = shalt.err (!%p134_p7)
}
  0x13   :  { %s189_s23 = smov 16   ;;  %s190_s24 = smov 1  }
  0x14   :  { %22 = dma.hbm_to_vmem [thread:$0]  %s261_s0, 16, %s17_s13, [#allocation3], %s189_s23, %s189_s23, %s190_s24  }
  0x15   :  { %s191_s27 = smov [#allocation5]   ;;  %s138_s4 = scalar_lea.hbm %s262_s1, 64 }
  0x16   :  { %s29_s28 = sshll.u32 %s191_s27, 4  ;;  %p139_p8 = scmp.ne.s32.totalorder %s262_s1, %s138_s4  ;;  %s30_s28 = int_to_ptr.vmem [resolvable:$true] %s29_s28 }
  0x17   :  { %p142_p9 = scmp.lt.u32.totalorder %s138_s4, %s262_s1 }
  0x19   :  { %p144_p10 = pnand %p142_p9, %p139_p8 }
  0x1b   :  { %147 = shalt.err (!%p144_p10)
}
  0x1c   :  { %s148_s9 = scalar_lea.vmem %s30_s28, 64  ;;  %p153_p12 = scmp.lt.s32.totalorder %s30_s28, %s30_s28 }
  0x1d   :  { %p149_p11 = scmp.ne.s32.totalorder %s30_s28, %s148_s9  ;;  %p154_p13 = scmp.lt.s32.totalorder %s148_s9, %s148_s9 }
  0x1f   :  { %p155_p0 = por %p154_p13, %p153_p12 }
  0x21   :  { %p156_p1 = pnand %p155_p0, %p149_p11 }
  0x23   :  { %159 = shalt.err (!%p156_p1)
}
  0x24   :  { %32 = dma.hbm_to_vmem [thread:$0]  %s262_s1, 64, %s30_s28, [#allocation6]  }
  0x25   :  { %182 = dma.done.wait [#allocation3], 128  }
  0x26   :  { %183 = vsyncadd [#allocation3], 4294967168 }
  0x27   :  { %184 = dma.done.wait [#allocation6], 64  }
  0x28   :  { %185 = vsyncadd [#allocation6], 4294967232  ;;  %v192_v0 = vmov 0   ;;  %v193_v1 = vmov 2   ;;  %v41_v2 = vld [vmem:[#allocation2] sm:$0xff]  ;;  %v194_v3 = vmov 1   ;;  %v49_v4 = vlaneseq }
  0x29   :  { %112 = vset.pattern.permute.xlu0 %v192_v0  ;;  %114 = vset.pattern.permute.xlu1 %v193_v1  ;;  %v42_v7 = vld [vmem:[#allocation5] sm:$0x7]  ;;  %v103_v15 = vld [vmem:[%s263_s2] ss:$0 sm:$0xff]  ;;  %vm83_vm0 = vcmask 23552  }
  0x2a   :  { %46 = vperm.xlu0 %112, %v41_v2   ;;  %72 = vperm.xlu1 %114, %v41_v2   ;;  %v50_v5 = vshrl.u32 %v49_v4, 7 }
  0x2c   :  { %v51_v6 = vsub.s32 0, %v50_v5  ;;  %v67_v9 = vsub.s32 1, %v50_v5  ;;  %v77_v10 = vsub.s32 2, %v50_v5 }
  0x2e   :  { %113 = vset.pattern.permute.xlu0 %v194_v3  ;;  %v52_v8 = vrot.slane %v42_v7, %v51_v6  ;;  %v68_v13 = vrot.slane %v42_v7, %v67_v9  ;;  %v78_v14 = vrot.slane %v42_v7, %v77_v10 }
  0x2f   :  { %62 = vperm.xlu0 %113, %v41_v2  }
  0x33   :  { %115 = vset.pattern.permute.xlu0 %v193_v1 }
  0xa9   :  { %v47_v11 = vpop.permute.xlu0 %46  ;;  %v73_v16 = vpop.permute.xlu1 %72 }
  0xaa   :  { %v53_v12 = vmul.f32 %v52_v8, %v47_v11  ;;  %v79_v20 = vmul.f32 %v78_v14, %v73_v16 }
  0xac   :  { %v60_v18 = vadd.f32 %v103_v15, %v53_v12 }
  0xae   :  { %v63_v17 = vpop.permute.xlu0 %62 }
  0xaf   :  { %v69_v19 = vmul.f32 %v68_v13, %v63_v17 }
  0xb1   :  { %v70_v21 = vadd.f32 %v69_v19, %v60_v18 }
  0xb3   :  { %v80_v22 = vadd.f32 %v79_v20, %v70_v21 }
  0xb5   :  { %v81_v23 = vmax.f32 %v80_v22, 0.0 }
  0xb7   :  { %v82_v24 = vmin.f32 %v81_v23, 1.0 }
  0xb9   :  { %84 = vst.msk [vmem:[#allocation7] sm:$0xff] %vm83_vm0, %v82_v24 }
  0xba   :  { %89 = vsyncadd [#allocation4], 112  ;;  %s195_s12 = smov [#allocation7]  }
  0xbb   :  { %s90_s13 = sshll.u32 %s195_s12, 4  ;;  %s91_s13 = int_to_ptr.vmem [resolvable:$true] %s90_s13 }
  0xbc   :  { %s160_s14 = scalar_lea.vmem %s91_s13, 16  ;;  %s164_s15 = scalar_lea.vmem %s91_s13, 128 }
  0xbd   :  { %p161_p2 = scmp.ne.s32.totalorder %s91_s13, %s160_s14  ;;  %p165_p3 = scmp.lt.s32.totalorder %s91_s13, %s91_s13 }
  0xbe   :  { %p166_p4 = scmp.lt.s32.totalorder %s164_s15, %s160_s14 }
  0xc0   :  { %p167_p5 = por %p166_p4, %p165_p3 }
  0xc2   :  { %p168_p6 = pnand %p167_p5, %p161_p2 }
  0xc4   :  { %171 = shalt.err (!%p168_p6)
}
  0xc5   :  { %s172_s17 = scalar_lea.hbm %s264_s3, 16 }
  0xc6   :  { %p173_p7 = scmp.ne.s32.totalorder %s264_s3, %s172_s17  ;;  %p176_p8 = scmp.lt.u32.totalorder %s172_s17, %s264_s3 }
  0xc8   :  { %p178_p9 = pnand %p176_p8, %p173_p7 }
  0xca   :  { %181 = shalt.err (!%p178_p9)
}
  0xcb   :  { %96 = dma.vmem_to_hbm [thread:$0]  %s91_s13, 16, %s264_s3, [#allocation4], %s189_s23, %s189_s23, %s190_s24  }
  0xcc   :  { %186 = dma.done.wait [#allocation4], 128  }
  0xcd   :  { %187 = vsyncadd [#allocation4], 4294967168 }
  0xce   :  { %100 = vsyncpa [#allocation3], 1 }
  0xcf   :  { %101 = vsyncpa [#allocation6], 1 }
  0xd0   :  { %102 = vsyncpa [#allocation4], 1 }

</bundles_post_ra>
